<compile_context>
chip_gen: v7x
topology: tpu7x:2x2x1
jax: 0.10.0
libtpu: 0.0.40
codegen_flags: <defaults>
</compile_context>

<pallas_src>
import functools

import jax
import jax.numpy as jnp
from jax.experimental import pallas as pl
from jax.experimental.pallas import tpu as pltpu

NEG_SLOPE = 0.1


def _leaky_relu(v):
    return jnp.where(v > 0, v, NEG_SLOPE * v)


def nummut_kernel(x_ref,
                  w_in_ref, b_in_ref,
                  w0_ref, b0_ref,
                  w1_ref, b1_ref,
                  w2_ref, b2_ref,
                  w_out_ref, b_out_ref,
                  out_ref,
                  *, compute_dtype):
    """Entire MLP forward for one batch tile, fully resident in VMEM."""

    def dense(h, w_ref, b_ref):
        # MXU matmul with f32 accumulation; bias added in f32.
        return (jnp.dot(h.astype(compute_dtype), w_ref[...],
                        preferred_element_type=jnp.float32)
                + b_ref[...].astype(jnp.float32))

    # input layer + LeakyReLU (dropout = identity at inference)
    h = _leaky_relu(dense(x_ref[...], w_in_ref, b_in_ref))
    # hidden layers (kernel specialized for n_layers = 3)
    h = _leaky_relu(dense(h, w0_ref, b0_ref))
    h = _leaky_relu(dense(h, w1_ref, b1_ref))
    h = _leaky_relu(dense(h, w2_ref, b2_ref))
    # output layer (no activation); out is lane-dense (padded to 128 cols)
    out_ref[...] = dense(h, w_out_ref, b_out_ref).astype(out_ref.dtype)


def nummut_forward(x, params, *, batch_tile=1024, use_bf16=False):
    """Run NumMutNet forward with a Pallas kernel.

    x: (B, input_dim) float32
    params: dict with pre-transposed weights:
        w_in (input_dim, H), b_in (1, H)
        w0/w1/w2 (H, H), b0/b1/b2 (1, H)
        w_out (H, output_dim), b_out (1, output_dim)
    batch_tile: rows per grid step (multiple of 8). None => whole batch.
    use_bf16: cast weights/activations to bf16 before each dot (f32 accum).
    """
    B, input_dim = x.shape
    H = params["w_in"].shape[1]
    output_dim = params["w_out"].shape[1]

    if batch_tile is not None:
        assert batch_tile % 8 == 0, "batch_tile must be a multiple of 8"

    # ---- batch tiling (sublane-aligned; pad batch if needed) ---------------
    b8 = 8 * pl.cdiv(B, 8)                       # round batch up to sublane
    tb = b8 if batch_tile is None else min(batch_tile, b8)
    bp = tb * pl.cdiv(b8, tb)                    # padded batch (multiple of tb)
    if bp != B:
        x = jnp.pad(x, ((0, bp - B), (0, 0)))

    # ---- lane-dense padded output (9 -> 128) -------------------------------
    out_pad = 128 * pl.cdiv(output_dim, 128)
    w_out = params["w_out"]
    b_out = params["b_out"]
    if out_pad != output_dim:
        w_out = jnp.pad(w_out, ((0, 0), (0, out_pad - output_dim)))
        b_out = jnp.pad(b_out, ((0, 0), (0, out_pad - output_dim)))

    weight_dtype = jnp.bfloat16 if use_bf16 else jnp.float32
    compute_dtype = jnp.bfloat16 if use_bf16 else jnp.float32
    weights = [params["w_in"], params["b_in"],
               params["w0"], params["b0"],
               params["w1"], params["b1"],
               params["w2"], params["b2"],
               w_out, b_out]
    weights = [w.astype(weight_dtype) for w in weights]

    # ---- BlockSpecs ---------------------------------------------------------
    def full_spec(arr):                          # all weights/biases are 2-D
        return pl.BlockSpec(arr.shape, lambda i: (0, 0))

    in_specs = ([pl.BlockSpec((tb, input_dim), lambda i: (i, 0))]  # x over batch
                + [full_spec(w) for w in weights])
    out_specs = pl.BlockSpec((tb, out_pad), lambda i: (i, 0))

    # ---- explicit VMEM budget (double-buffered tiles + weights + headroom) --
    def _tile_bytes(rows, cols, itemsize):
        # account for (8,128) VMEM layout padding
        return (8 * pl.cdiv(rows, 8)) * (128 * pl.cdiv(cols, 128)) * itemsize

    weight_bytes = sum(int(w.size) * w.dtype.itemsize for w in weights)
    vmem_needed = (2 * _tile_bytes(tb, input_dim, 4)         # x (double-buffered)
                   + 2 * _tile_bytes(tb, out_pad, 4)          # out (double-buffered)
                   + 2 * weight_bytes                         # weights (resident)
                   + 6 * _tile_bytes(tb, max(H, out_pad), 4)  # activations
                   + (4 << 20))                               # slack
    vmem_limit = int(min(max(vmem_needed, 32 << 20), 64 << 20))

    # ---- advisory cost estimate ---------------------------------------------
    flops = int(2 * bp * (input_dim * H + 3 * H * H + H * out_pad))
    bytes_accessed = int(bp * (input_dim * 4 + out_pad * 4) + weight_bytes)
    cost = pl.CostEstimate(flops=flops, transcendentals=0,
                           bytes_accessed=bytes_accessed)

    out = pl.pallas_call(
        functools.partial(nummut_kernel, compute_dtype=compute_dtype),
        out_shape=jax.ShapeDtypeStruct((bp, out_pad), jnp.float32),
        grid_spec=pltpu.PrefetchScalarGridSpec(
            num_scalar_prefetch=0,
            grid=(bp // tb,),
            in_specs=in_specs,
            out_specs=out_specs,
        ),
        compiler_params=pltpu.CompilerParams(
            dimension_semantics=("parallel",),
            vmem_limit_bytes=vmem_limit),
        cost_estimate=cost,
    )(x, *weights)

    # Strip batch padding and the lane padding of the output.
    return out[:B, :output_dim]


def init_params(key, hidden_dim=32, input_dim=72, output_dim=9, n_layers=3):
    """Deterministic PyTorch-style (Kaiming-uniform-ish) init.

    Weights stored pre-transposed as (in_dim, out_dim)."""
    assert n_layers == 3, "kernel is specialized for n_layers=3"
    params = {}
    dims = ([("w_in", "b_in", input_dim, hidden_dim)]
            + [(f"w{i}", f"b{i}", hidden_dim, hidden_dim) for i in range(n_layers)]
            + [("w_out", "b_out", hidden_dim, output_dim)])
    keys = jax.random.split(key, 2 * len(dims))
    for idx, (wname, bname, fan_in, fan_out) in enumerate(dims):
        bound = 1.0 / jnp.sqrt(fan_in)
        w = jax.random.uniform(keys[2 * idx], (fan_in, fan_out),
                               minval=-bound, maxval=bound, dtype=jnp.float32)
        b = jax.random.uniform(keys[2 * idx + 1], (1, fan_out),
                               minval=-bound, maxval=bound, dtype=jnp.float32)
        params[wname] = w
        params[bname] = b
    return params


def reference_forward(x, params):
    """Pure-JAX reference for correctness checking."""
    h = _leaky_relu(x @ params["w_in"] + params["b_in"])
    for i in range(3):
        h = _leaky_relu(h @ params[f"w{i}"] + params[f"b{i}"])
    return h @ params["w_out"] + params["b_out"]


if __name__ == "__main__":
    key = jax.random.PRNGKey(0)
    k_params, k_x = jax.random.split(key)

    batch = 24
    hidden_dim = 32
    input_dim = 72
    output_dim = 9

    params = init_params(k_params, hidden_dim=hidden_dim,
                         input_dim=input_dim, output_dim=output_dim)
    x = jax.random.normal(k_x, (batch, input_dim), dtype=jnp.float32)
    ref = reference_forward(x, params)

    # 1) default tile (single grid step at this small batch)
    out = jax.block_until_ready(nummut_forward(x, params))
    assert out.shape == (batch, output_dim)
    assert jnp.allclose(out, ref, atol=1e-4, rtol=1e-4), "mismatch (default tile)"

    # 2) multi-step pipelined grid (batch_tile=8 -> 3 grid steps)
    out_t = jax.block_until_ready(nummut_forward(x, params, batch_tile=8))
    assert jnp.allclose(out_t, ref, atol=1e-4, rtol=1e-4), "mismatch (tiled)"

    # 3) batch not a multiple of the tile (exercises batch padding)
    out_odd = jax.block_until_ready(nummut_forward(x[:13], params, batch_tile=8))
    assert out_odd.shape == (13, output_dim)
    assert jnp.allclose(out_odd, ref[:13], atol=1e-4, rtol=1e-4), "mismatch (padded batch)"

    # 4) bf16 weights/activations with f32 accumulation (v6e/v7x MXU path)
    out_bf16 = jax.block_until_ready(
        nummut_forward(x, params, batch_tile=8, use_bf16=True))
    assert jnp.allclose(out_bf16, ref, atol=1e-1, rtol=1e-1), "mismatch (bf16)"

    print("KERNEL_OK")
</pallas_src>

<mosaic_0001>
module attributes {stable_mosaic.version = 11 : i64} {
  func.func @nummut_kernel(%arg0: i32, %arg1: memref<24x72xf32, #tpu.memory_space<vmem>>, %arg2: memref<72x32xf32, #tpu.memory_space<vmem>>, %arg3: memref<1x32xf32, #tpu.memory_space<vmem>>, %arg4: memref<32x32xf32, #tpu.memory_space<vmem>>, %arg5: memref<1x32xf32, #tpu.memory_space<vmem>>, %arg6: memref<32x32xf32, #tpu.memory_space<vmem>>, %arg7: memref<1x32xf32, #tpu.memory_space<vmem>>, %arg8: memref<32x32xf32, #tpu.memory_space<vmem>>, %arg9: memref<1x32xf32, #tpu.memory_space<vmem>>, %arg10: memref<32x128xf32, #tpu.memory_space<vmem>>, %arg11: memref<1x128xf32, #tpu.memory_space<vmem>>, %arg12: memref<24x128xf32, #tpu.memory_space<vmem>>) attributes {dimension_semantics = [#tpu.dimension_semantics<parallel>], iteration_bounds = array<i64: 1>, scalar_prefetch = 0 : i64, scratch_operands = 0 : i64, tpu.core_type = #tpu.core_type<tc>, window_params = [{transform_indices = @transform_0, window_bounds = array<i64: 24, 72>}, {pipeline_mode = #tpu.pipeline_mode<synchronous>, transform_indices = @transform_1, window_bounds = array<i64: 72, 32>}, {pipeline_mode = #tpu.pipeline_mode<synchronous>, transform_indices = @transform_2, window_bounds = array<i64: 1, 32>}, {pipeline_mode = #tpu.pipeline_mode<synchronous>, transform_indices = @transform_3, window_bounds = array<i64: 32, 32>}, {pipeline_mode = #tpu.pipeline_mode<synchronous>, transform_indices = @transform_4, window_bounds = array<i64: 1, 32>}, {pipeline_mode = #tpu.pipeline_mode<synchronous>, transform_indices = @transform_5, window_bounds = array<i64: 32, 32>}, {pipeline_mode = #tpu.pipeline_mode<synchronous>, transform_indices = @transform_6, window_bounds = array<i64: 1, 32>}, {pipeline_mode = #tpu.pipeline_mode<synchronous>, transform_indices = @transform_7, window_bounds = array<i64: 32, 32>}, {pipeline_mode = #tpu.pipeline_mode<synchronous>, transform_indices = @transform_8, window_bounds = array<i64: 1, 32>}, {pipeline_mode = #tpu.pipeline_mode<synchronous>, transform_indices = @transform_9, window_bounds = array<i64: 32, 128>}, {pipeline_mode = #tpu.pipeline_mode<synchronous>, transform_indices = @transform_10, window_bounds = array<i64: 1, 128>}, {transform_indices = @transform_11, window_bounds = array<i64: 24, 128>}]} {
    %c0 = arith.constant 0 : index
    %c0_0 = arith.constant 0 : index
    %0 = vector.load %arg1[%c0, %c0_0] : memref<24x72xf32, #tpu.memory_space<vmem>>, vector<24x72xf32>
    %c0_1 = arith.constant 0 : index
    %c0_2 = arith.constant 0 : index
    %1 = vector.load %arg2[%c0_1, %c0_2] : memref<72x32xf32, #tpu.memory_space<vmem>>, vector<72x32xf32>
    %cst = arith.constant dense<0.000000e+00> : vector<24x32xf32>
    %2 = tpu.matmul %0, %1, %cst {dimension_numbers = #tpu.dot_dimension_numbers<[1], [0], [0], [1], [0, 0, 1, 1], [], []>} : vector<24x72xf32>, vector<72x32xf32>, vector<24x32xf32> -> vector<24x32xf32>
    %c0_3 = arith.constant 0 : index
    %c0_4 = arith.constant 0 : index
    %3 = vector.load %arg3[%c0_3, %c0_4] : memref<1x32xf32, #tpu.memory_space<vmem>>, vector<1x32xf32>
    %4 = vector.broadcast %3 : vector<1x32xf32> to vector<24x32xf32>
    %5 = arith.addf %2, %4 : vector<24x32xf32>
    %cst_5 = arith.constant 0.000000e+00 : f32
    %6 = vector.broadcast %cst_5 : f32 to vector<24x32xf32>
    %7 = arith.cmpf ogt, %5, %6 : vector<24x32xf32>
    %cst_6 = arith.constant 1.000000e-01 : f32
    %8 = vector.broadcast %cst_6 : f32 to vector<24x32xf32>
    %9 = arith.mulf %8, %5 : vector<24x32xf32>
    %10 = arith.select %7, %5, %9 : vector<24x32xi1>, vector<24x32xf32>
    %c0_7 = arith.constant 0 : index
    %c0_8 = arith.constant 0 : index
    %11 = vector.load %arg4[%c0_7, %c0_8] : memref<32x32xf32, #tpu.memory_space<vmem>>, vector<32x32xf32>
    %cst_9 = arith.constant dense<0.000000e+00> : vector<24x32xf32>
    %12 = tpu.matmul %10, %11, %cst_9 {dimension_numbers = #tpu.dot_dimension_numbers<[1], [0], [0], [1], [0, 0, 1, 1], [], []>} : vector<24x32xf32>, vector<32x32xf32>, vector<24x32xf32> -> vector<24x32xf32>
    %c0_10 = arith.constant 0 : index
    %c0_11 = arith.constant 0 : index
    %13 = vector.load %arg5[%c0_10, %c0_11] : memref<1x32xf32, #tpu.memory_space<vmem>>, vector<1x32xf32>
    %14 = vector.broadcast %13 : vector<1x32xf32> to vector<24x32xf32>
    %15 = arith.addf %12, %14 : vector<24x32xf32>
    %cst_12 = arith.constant 0.000000e+00 : f32
    %16 = vector.broadcast %cst_12 : f32 to vector<24x32xf32>
    %17 = arith.cmpf ogt, %15, %16 : vector<24x32xf32>
    %cst_13 = arith.constant 1.000000e-01 : f32
    %18 = vector.broadcast %cst_13 : f32 to vector<24x32xf32>
    %19 = arith.mulf %18, %15 : vector<24x32xf32>
    %20 = arith.select %17, %15, %19 : vector<24x32xi1>, vector<24x32xf32>
    %c0_14 = arith.constant 0 : index
    %c0_15 = arith.constant 0 : index
    %21 = vector.load %arg6[%c0_14, %c0_15] : memref<32x32xf32, #tpu.memory_space<vmem>>, vector<32x32xf32>
    %cst_16 = arith.constant dense<0.000000e+00> : vector<24x32xf32>
    %22 = tpu.matmul %20, %21, %cst_16 {dimension_numbers = #tpu.dot_dimension_numbers<[1], [0], [0], [1], [0, 0, 1, 1], [], []>} : vector<24x32xf32>, vector<32x32xf32>, vector<24x32xf32> -> vector<24x32xf32>
    %c0_17 = arith.constant 0 : index
    %c0_18 = arith.constant 0 : index
    %23 = vector.load %arg7[%c0_17, %c0_18] : memref<1x32xf32, #tpu.memory_space<vmem>>, vector<1x32xf32>
    %24 = vector.broadcast %23 : vector<1x32xf32> to vector<24x32xf32>
    %25 = arith.addf %22, %24 : vector<24x32xf32>
    %cst_19 = arith.constant 0.000000e+00 : f32
    %26 = vector.broadcast %cst_19 : f32 to vector<24x32xf32>
    %27 = arith.cmpf ogt, %25, %26 : vector<24x32xf32>
    %cst_20 = arith.constant 1.000000e-01 : f32
    %28 = vector.broadcast %cst_20 : f32 to vector<24x32xf32>
    %29 = arith.mulf %28, %25 : vector<24x32xf32>
    %30 = arith.select %27, %25, %29 : vector<24x32xi1>, vector<24x32xf32>
    %c0_21 = arith.constant 0 : index
    %c0_22 = arith.constant 0 : index
    %31 = vector.load %arg8[%c0_21, %c0_22] : memref<32x32xf32, #tpu.memory_space<vmem>>, vector<32x32xf32>
    %cst_23 = arith.constant dense<0.000000e+00> : vector<24x32xf32>
    %32 = tpu.matmul %30, %31, %cst_23 {dimension_numbers = #tpu.dot_dimension_numbers<[1], [0], [0], [1], [0, 0, 1, 1], [], []>} : vector<24x32xf32>, vector<32x32xf32>, vector<24x32xf32> -> vector<24x32xf32>
    %c0_24 = arith.constant 0 : index
    %c0_25 = arith.constant 0 : index
    %33 = vector.load %arg9[%c0_24, %c0_25] : memref<1x32xf32, #tpu.memory_space<vmem>>, vector<1x32xf32>
    %34 = vector.broadcast %33 : vector<1x32xf32> to vector<24x32xf32>
    %35 = arith.addf %32, %34 : vector<24x32xf32>
    %cst_26 = arith.constant 0.000000e+00 : f32
    %36 = vector.broadcast %cst_26 : f32 to vector<24x32xf32>
    %37 = arith.cmpf ogt, %35, %36 : vector<24x32xf32>
    %cst_27 = arith.constant 1.000000e-01 : f32
    %38 = vector.broadcast %cst_27 : f32 to vector<24x32xf32>
    %39 = arith.mulf %38, %35 : vector<24x32xf32>
    %40 = arith.select %37, %35, %39 : vector<24x32xi1>, vector<24x32xf32>
    %c0_28 = arith.constant 0 : index
    %c0_29 = arith.constant 0 : index
    %41 = vector.load %arg10[%c0_28, %c0_29] : memref<32x128xf32, #tpu.memory_space<vmem>>, vector<32x128xf32>
    %cst_30 = arith.constant dense<0.000000e+00> : vector<24x128xf32>
    %42 = tpu.matmul %40, %41, %cst_30 {dimension_numbers = #tpu.dot_dimension_numbers<[1], [0], [0], [1], [0, 0, 1, 1], [], []>} : vector<24x32xf32>, vector<32x128xf32>, vector<24x128xf32> -> vector<24x128xf32>
    %c0_31 = arith.constant 0 : index
    %c0_32 = arith.constant 0 : index
    %43 = vector.load %arg11[%c0_31, %c0_32] : memref<1x128xf32, #tpu.memory_space<vmem>>, vector<1x128xf32>
    %44 = vector.broadcast %43 : vector<1x128xf32> to vector<24x128xf32>
    %45 = arith.addf %42, %44 : vector<24x128xf32>
    %c0_33 = arith.constant 0 : index
    %c0_34 = arith.constant 0 : index
    %46 = vector.load %arg12[%c0_33, %c0_34] : memref<24x128xf32, #tpu.memory_space<vmem>>, vector<24x128xf32>
    tpu.vector_store %arg12[%c0_33, %c0_34], %45 {strides = array<i32>} : memref<24x128xf32, #tpu.memory_space<vmem>>, vector<24x128xf32>,
    return
  }
  func.func @transform_0(%arg0: i32) -> (i32, i32) {
    %c0_i32 = arith.constant 0 : i32
    %c0_i32_0 = arith.constant 0 : i32
    return %arg0, %c0_i32 : i32, i32
  }
  func.func @transform_1(%arg0: i32) -> (i32, i32) {
    %c0_i32 = arith.constant 0 : i32
    %c0_i32_0 = arith.constant 0 : i32
    %c0_i32_1 = arith.constant 0 : i32
    return %c0_i32, %c0_i32_0 : i32, i32
  }
  func.func @transform_2(%arg0: i32) -> (i32, i32) {
    %c0_i32 = arith.constant 0 : i32
    %c0_i32_0 = arith.constant 0 : i32
    %c0_i32_1 = arith.constant 0 : i32
    return %c0_i32, %c0_i32_0 : i32, i32
  }
  func.func @transform_3(%arg0: i32) -> (i32, i32) {
    %c0_i32 = arith.constant 0 : i32
    %c0_i32_0 = arith.constant 0 : i32
    %c0_i32_1 = arith.constant 0 : i32
    return %c0_i32, %c0_i32_0 : i32, i32
  }
  func.func @transform_4(%arg0: i32) -> (i32, i32) {
    %c0_i32 = arith.constant 0 : i32
    %c0_i32_0 = arith.constant 0 : i32
    %c0_i32_1 = arith.constant 0 : i32
    return %c0_i32, %c0_i32_0 : i32, i32
  }
  func.func @transform_5(%arg0: i32) -> (i32, i32) {
    %c0_i32 = arith.constant 0 : i32
    %c0_i32_0 = arith.constant 0 : i32
    %c0_i32_1 = arith.constant 0 : i32
    return %c0_i32, %c0_i32_0 : i32, i32
  }
  func.func @transform_6(%arg0: i32) -> (i32, i32) {
    %c0_i32 = arith.constant 0 : i32
    %c0_i32_0 = arith.constant 0 : i32
    %c0_i32_1 = arith.constant 0 : i32
    return %c0_i32, %c0_i32_0 : i32, i32
  }
  func.func @transform_7(%arg0: i32) -> (i32, i32) {
    %c0_i32 = arith.constant 0 : i32
    %c0_i32_0 = arith.constant 0 : i32
    %c0_i32_1 = arith.constant 0 : i32
    return %c0_i32, %c0_i32_0 : i32, i32
  }
  func.func @transform_8(%arg0: i32) -> (i32, i32) {
    %c0_i32 = arith.constant 0 : i32
    %c0_i32_0 = arith.constant 0 : i32
    %c0_i32_1 = arith.constant 0 : i32
    return %c0_i32, %c0_i32_0 : i32, i32
  }
  func.func @transform_9(%arg0: i32) -> (i32, i32) {
    %c0_i32 = arith.constant 0 : i32
    %c0_i32_0 = arith.constant 0 : i32
    %c0_i32_1 = arith.constant 0 : i32
    return %c0_i32, %c0_i32_0 : i32, i32
  }
  func.func @transform_10(%arg0: i32) -> (i32, i32) {
    %c0_i32 = arith.constant 0 : i32
    %c0_i32_0 = arith.constant 0 : i32
    %c0_i32_1 = arith.constant 0 : i32
    return %c0_i32, %c0_i32_0 : i32, i32
  }
  func.func @transform_11(%arg0: i32) -> (i32, i32) {
    %c0_i32 = arith.constant 0 : i32
    %c0_i32_0 = arith.constant 0 : i32
    return %arg0, %c0_i32 : i32, i32
  }
}

</mosaic_0001>

<bundles_post_ra>
// kernel: tpu_custom_call.1
= control target key start
LH: loop header
LB: loop body
LE: loop exit
PB: predicated region body
PF: predicated region fallthrough
CT: control target
= control target key end

     0   :  { %16 = vsyncpa [#allocation3], 0  ;;  %s1155_s0 = inlined_call_operand.hbm [shape: f32[24,72], index: 0, kind: input, shape index: {}]   ;;  %s1156_s1 = inlined_call_operand.vmem [shape: f32[72,32], index: 1, kind: input, shape index: {}]   ;;  %s1157_s2 = inlined_call_operand.vmem [shape: f32[1,32], index: 2, kind: input, shape index: {}]   ;;  %s1158_s3 = inlined_call_operand.vmem [shape: f32[32,32], index: 3, kind: input, shape index: {}]   ;;  %s1159_s4 = inlined_call_operand.vmem [shape: f32[1,32], index: 4, kind: input, shape index: {}]   ;;  %s1160_s5 = inlined_call_operand.vmem [shape: f32[32,32], index: 5, kind: input, shape index: {}]   ;;  %s1161_s6 = inlined_call_operand.hbm [shape: f32[1,32], index: 6, kind: input, shape index: {}]   ;;  %s1162_s7 = inlined_call_operand.vmem [shape: f32[32,32], index: 7, kind: input, shape index: {}]   ;;  %s1163_s8 = inlined_call_operand.vmem [shape: f32[1,32], index: 8, kind: input, shape index: {}]   ;;  %s1164_s9 = inlined_call_operand.vmem [shape: f32[32,128], index: 9, kind: input, shape index: {}]   ;;  %s1165_s10 = inlined_call_operand.vmem [shape: f32[1,128], index: 10, kind: input, shape index: {}]   ;;  %s1166_s11 = inlined_call_operand.hbm [shape: f32[24,128], index: 11, kind: output, shape index: {}]  }
   0x1   :  { %17 = vsyncpa [#allocation6], 0 }
   0x2   :  { %18 = vsyncpa [#allocation4], 0  ;;  %s903_s17 = smov [#allocation2]   ;;  %s831_s21 = scalar_lea.hbm %s1155_s0, 384 }
   0x3   :  { %s24_s18 = sshll.u32 %s903_s17, 4  ;;  %p832_p0 = scmp.ne.s32.totalorder %s1155_s0, %s831_s21  ;;  %s25_s18 = int_to_ptr.vmem [resolvable:$true] %s24_s18 }
   0x4   :  { %p835_p1 = scmp.lt.u32.totalorder %s831_s21, %s1155_s0 }
   0x6   :  { %p837_p2 = pnand %p835_p1, %p832_p0 }
   0x8   :  { %840 = shalt.err (!%p837_p2)
}
   0x9   :  { %s841_s26 = scalar_lea.vmem %s25_s18, 384  ;;  %p846_p4 = scmp.lt.s32.totalorder %s25_s18, %s25_s18 }
   0xa   :  { %p842_p3 = scmp.ne.s32.totalorder %s25_s18, %s841_s26  ;;  %p847_p5 = scmp.lt.s32.totalorder %s841_s26, %s841_s26 }
   0xc   :  { %p848_p6 = por %p847_p5, %p846_p4 }
   0xe   :  { %p849_p7 = pnand %p848_p6, %p842_p3 }
  0x10   :  { %852 = shalt.err (!%p849_p7)
}
  0x11   :  { %s904_s27 = smov 128   ;;  %s905_s28 = smov 8  }
  0x12   :  { %30 = dma.hbm_to_vmem [thread:$0]  %s1155_s0, 384, %s25_s18, [#allocation3], %s904_s27, %s904_s27, %s905_s28  }
  0x13   :  { %s906_s12 = smov [#allocation5]   ;;  %s853_s16 = scalar_lea.hbm %s1161_s6, 16 }
  0x14   :  { %s47_s13 = sshll.u32 %s906_s12, 4  ;;  %p854_p8 = scmp.ne.s32.totalorder %s1161_s6, %s853_s16  ;;  %s48_s13 = int_to_ptr.vmem [resolvable:$true] %s47_s13 }
  0x15   :  { %p857_p9 = scmp.lt.u32.totalorder %s853_s16, %s1161_s6 }
  0x17   :  { %p859_p10 = pnand %p857_p9, %p854_p8 }
  0x19   :  { %862 = shalt.err (!%p859_p10)
}
  0x1a   :  { %s863_s22 = scalar_lea.vmem %s48_s13, 16  ;;  %s867_s0 = scalar_lea.vmem %s48_s13, 32 }
  0x1b   :  { %p864_p11 = scmp.ne.s32.totalorder %s48_s13, %s863_s22  ;;  %p868_p12 = scmp.lt.s32.totalorder %s48_s13, %s48_s13 }
  0x1c   :  { %p869_p13 = scmp.lt.s32.totalorder %s867_s0, %s863_s22 }
  0x1e   :  { %p870_p0 = por %p869_p13, %p868_p12 }
  0x20   :  { %p871_p1 = pnand %p870_p0, %p864_p11 }
  0x22   :  { %874 = shalt.err (!%p871_p1)
}
  0x23   :  { %50 = dma.hbm_to_vmem [thread:$0]  %s1161_s6, 16, %s48_s13, [#allocation6]  }
  0x24   :  { %897 = dma.done.wait [#allocation3], 384  }
  0x25   :  { %898 = vsyncadd [#allocation3], 4294966912 }
  0x26   :  { %899 = dma.done.wait [#allocation6], 16  }
  0x27   :  { %900 = vsyncadd [#allocation6], 4294967280  ;;  %v907_v0 = vmov 0.0|0.0   ;;  %vm908_vm0 = vmmov 0   ;;  %v909_v1 = vmov 0.0   ;;  %v68_v2 = vld [vmem:[%s1156_s1] sm:$0xff] }
  0x28   :  { %787 = vmatprep.subr.bf16.mxu0 %v907_v0  ;;  %710 = vmatprep.mubr.msk.f32.mxu0 %vm908_vm0, %v909_v1  ;;  %v69_v3 = vld [vmem:[%s1156_s1 + $0x8] sm:$0xff]  ;;  %v70_v4 = vld [vmem:[%s1156_s1 + $0x10] sm:$0xff]  ;;  %v71_v6 = vld [vmem:[%s1156_s1 + $0x18] sm:$0xff]  ;;  %vm84_vm1 = vcmask 588800   ;;  %vm194_vm3 = vcmask 261120   ;;  %s910_s17 = smov [#allocation7]  }
  0x29   :  { %799 = vmatprep.subr.bf16.mxu1 %v907_v0  ;;  %727 = vmatprep.mubr.msk.f32.mxu1 %vm908_vm0, %v909_v1  ;;  %v788_v5 = vpack.c.bf16 %v69_v3, %v68_v2  ;;  %v791_v7 = vpack.c.bf16 %v71_v6, %v70_v4  ;;  %v72_v8 = vld [vmem:[%s1156_s1 + $0x20] sm:$0xff]  ;;  %v73_v9 = vld [vmem:[%s1156_s1 + $0x28] sm:$0xff]  ;;  %v74_v14 = vld [vmem:[%s1156_s1 + $0x30] sm:$0xff] }
  0x2a   :  { %v183_v10 = vld [vmem:[%s1158_s3] sm:$0xff]  ;;  %v184_v11 = vld [vmem:[%s1158_s3 + $0x8] sm:$0xff]  ;;  %v794_v13 = vpack.c.bf16 %v73_v9, %v72_v8  ;;  %v75_v15 = vld [vmem:[%s1156_s1 + $0x38] sm:$0xff] }
  0x2b   :  { %789 = vmatpush3.bf16.msra.mxu0 %v788_v5  ;;  %v800_v12 = vpack.c.bf16 %v184_v11, %v183_v10  ;;  %v797_v16 = vpack.c.bf16 %v75_v15, %v74_v14  ;;  %v76_v17 = vld [vmem:[%s1156_s1 + $0x40] sm:$0xff]  ;;  %v66_v19 = vld [vmem:[#allocation2 + $0x8] sm:$0xff]  ;;  %v67_v20 = vld [vmem:[#allocation2 + $0x10] sm:$0xff] }
  0x2c   :  { %790 = vmatprep.subr.bf16.mxu0 %v907_v0  ;;  %v65_v18 = vld [vmem:[#allocation2] sm:$0xff]  ;;  %v185_v21 = vld [vmem:[%s1158_s3 + $0x10] sm:$0xff]  ;;  %v186_v22 = vld [vmem:[%s1158_s3 + $0x18] sm:$0xff] }
  0x2d   :  { %801 = vmatpush3.bf16.msra.mxu1 %v800_v12  ;;  %v803_v23 = vpack.c.bf16 %v186_v22, %v185_v21  ;;  %v632_v24 = vld [vmem:[%s1157_s2] ss:$0 sm:$0xff]  ;;  %v294_v27 = vld [vmem:[%s1160_s5 + $0x8] sm:$0xff]  ;;  %v295_v43 = vld [vmem:[%s1160_s5 + $0x10] sm:$0xff]  ;;  %s619_s2 = sshll.u32 %s910_s17, 4  ;;  %s620_s2 = int_to_ptr.vmem [resolvable:$true] %s619_s2 }
  0x2e   :  { %802 = vmatprep.subr.bf16.mxu1 %v907_v0  ;;  %v293_v26 = vld [vmem:[%s1160_s5] sm:$0xff]  ;;  %v296_v44 = vld [vmem:[%s1160_s5 + $0x18] sm:$0xff]  ;;  %v403_v47 = vld [vmem:[%s1162_s7 + $0x8] sm:$0xff]  ;;  %s875_s3 = scalar_lea.vmem %s620_s2, 384  ;;  %p880_p3 = scmp.lt.s32.totalorder %s620_s2, %s620_s2 }
  0x2f   :  { %792 = vmatpush3.bf16.msra.mxu0 %v791_v7  ;;  %v806_v31 = vpack.c.bf16 %v294_v27, %v293_v26  ;;  %v809_v45 = vpack.c.bf16 %v296_v44, %v295_v43  ;;  %v402_v46 = vld [vmem:[%s1162_s7] sm:$0xff]  ;;  %v404_v3 = vld [vmem:[%s1162_s7 + $0x10] sm:$0xff]  ;;  %v405_v4 = vld [vmem:[%s1162_s7 + $0x18] sm:$0xff]  ;;  %p876_p2 = scmp.ne.s32.totalorder %s620_s2, %s875_s3  ;;  %p881_p4 = scmp.lt.s32.totalorder %s875_s3, %s875_s3 }
  0x30   :  { %793 = vmatprep.subr.bf16.mxu0 %v907_v0  ;;  %v812_v48 = vpack.c.bf16 %v403_v47, %v402_v46  ;;  %v636_v49 = vld [vmem:[%s1159_s4] ss:$0 sm:$0xff]  ;;  %v815_v5 = vpack.c.bf16 %v405_v4, %v404_v3  ;;  %v512_v7 = vld [vmem:[%s1164_s9 + $0x8] sm:$0xff]  ;;  %v640_v9 = vld [vmem:[#allocation5] ss:$0 sm:$0xff] }
  0x31   :  { %804 = vmatpush3.bf16.msra.mxu1 %v803_v23  ;;  %v511_v6 = vld [vmem:[%s1164_s9] sm:$0xff]  ;;  %p882_p5 = por %p881_p4, %p880_p3 }
  0x32   :  { %805 = vmatprep.subr.bf16.mxu1 %v907_v0  ;;  %v818_v8 = vpack.c.bf16 %v512_v7, %v511_v6  ;;  %v644_v27 = vld [vmem:[%s1163_s8] ss:$0 sm:$0xff] }
  0x33   :  { %795 = vmatpush3.bf16.msra.mxu0 %v794_v13  ;;  %v648_v43 = vld [vmem:[%s1165_s10] ss:$0 sm:$0xff]  ;;  %p883_p6 = pnand %p882_p5, %p876_p2 }
  0x34   :  { %796 = vmatprep.subr.bf16.mxu0 %v907_v0 }
  0x37   :  { %798 = vmatpush3.bf16.msra.mxu0 %v797_v16 }
  0x38   :  { %708 = vmatprep.subr.mxu0 %v909_v1 }
  0x3b   :  { %709 = vmatpush3.msra.mxu0 %v76_v17 }
  0x3c   :  { %711 = vmatmul.mubr.msk.f32.vlgmr.msra.gmra.mrb[0].mxu0 %vm84_vm1, %v65_v18  ;;  %811 = vmatprep.subr.bf16.mxu0 %v907_v0 }
  0x3d   :  { %713 = vmatprep.mubr.msk.f32.mxu0 %vm908_vm0, %v909_v1  ;;  %813 = vmatpush3.bf16.msra.mxu0 %v812_v48 }
  0x3e   :  { %814 = vmatprep.subr.bf16.mxu0 %v907_v0 }
  0x40   :  { %714 = vmatmul.mubr.msk.f32.gmra.mrb[2].mxu0 %vm84_vm1, %v66_v19 }
  0x41   :  { %716 = vmatprep.mubr.msk.f32.mxu0 %vm908_vm0, %v909_v1  ;;  %816 = vmatpush3.bf16.msra.mxu0 %v815_v5 }
  0x44   :  { %717 = vmatmul.mubr.msk.f32.gmra.mrb[4].mxu0 %vm84_vm1, %v67_v20 }
  0x45   :  { %761 = vmatprep.mubr.msk.f32.mxu0 %vm908_vm0, %v909_v1 }
 0x10f   :  { %v160_v25 = vpop.f32.mrb[0].mxu0 }
 0x110   :  { %v161_v28 = vadd.f32 %v632_v24, %v160_v25  ;;  %v712_v29 = vpop.f32.mrb[1].mxu0  ;;  %v514_v25 = vld [vmem:[%s1164_s9 + $0x18] sm:$0xff] }
 0x112   :  { %vm174_vm2 = vcmp.gt.f32.partialorder %v161_v28, 0.0  ;;  %v177_v30 = vmul.f32 0.1, %v161_v28 }
 0x113   :  { %v165_v32 = vpop.f32.mrb[2].mxu0 }
 0x114   :  { %v166_v33 = vadd.f32 %v632_v24, %v165_v32  ;;  %v715_v34 = vpop.f32.mrb[3].mxu0  ;;  %v180_v35 = vsel %vm174_vm2, %v161_v28, %v177_v30 }
 0x115   :  { %728 = vmatmul.mubr.msk.f32.vlgmr.msra.gmra.mrb[0].mxu1 %vm194_vm3, %v180_v35 }
 0x116   :  { %vm175_vm4 = vcmp.gt.f32.partialorder %v166_v33, 0.0  ;;  %v178_v36 = vmul.f32 0.1, %v166_v33  ;;  %730 = vmatprep.mubr.msk.f32.mxu1 %vm908_vm0, %v909_v1  ;;  %807 = vmatpush3.bf16.msra.mxu1 %v806_v31 }
 0x117   :  { %v170_v37 = vpop.f32.mrb[4].mxu0  ;;  %808 = vmatprep.subr.bf16.mxu1 %v907_v0 }
 0x118   :  { %v171_v38 = vadd.f32 %v632_v24, %v170_v37  ;;  %v718_v39 = vpop.f32.mrb[5].mxu0  ;;  %v181_v40 = vsel %vm175_vm4, %v166_v33, %v178_v36  ;;  %v513_v24 = vld [vmem:[%s1164_s9 + $0x10] sm:$0xff] }
 0x119   :  { %731 = vmatmul.mubr.msk.f32.gmra.mrb[2].mxu1 %vm194_vm3, %v181_v40  ;;  %v821_v26 = vpack.c.bf16 %v514_v25, %v513_v24 }
 0x11a   :  { %vm176_vm5 = vcmp.gt.f32.partialorder %v171_v38, 0.0  ;;  %v179_v41 = vmul.f32 0.1, %v171_v38  ;;  %733 = vmatprep.mubr.msk.f32.mxu1 %vm908_vm0, %v909_v1  ;;  %810 = vmatpush3.bf16.msra.mxu1 %v809_v45 }
 0x11b   :  { %817 = vmatprep.subr.bf16.mxu1 %v907_v0 }
 0x11c   :  { %v182_v42 = vsel %vm176_vm5, %v171_v38, %v179_v41 }
 0x11d   :  { %734 = vmatmul.mubr.msk.f32.gmra.mrb[4].mxu1 %vm194_vm3, %v182_v42 }
 0x11e   :  { %744 = vmatprep.mubr.msk.f32.mxu1 %vm908_vm0, %v909_v1 }
 0x1e8   :  { %v270_v50 = vpop.f32.mrb[0].mxu1 }
 0x1e9   :  { %v271_v51 = vadd.f32 %v636_v49, %v270_v50  ;;  %v729_v52 = vpop.f32.mrb[1].mxu1 }
 0x1eb   :  { %vm284_vm6 = vcmp.gt.f32.partialorder %v271_v51, 0.0  ;;  %v287_v53 = vmul.f32 0.1, %v271_v51 }
 0x1ec   :  { %v275_v54 = vpop.f32.mrb[2].mxu1 }
 0x1ed   :  { %v290_v55 = vsel %vm284_vm6, %v271_v51, %v287_v53  ;;  %v276_v56 = vadd.f32 %v636_v49, %v275_v54  ;;  %v732_v57 = vpop.f32.mrb[3].mxu1 }
 0x1ee   :  { %745 = vmatmul.mubr.msk.f32.vlgmr.msra.gmra.mrb[6].mxu1 %vm194_vm3, %v290_v55 }
 0x1ef   :  { %vm285_vm7 = vcmp.gt.f32.partialorder %v276_v56, 0.0  ;;  %v288_v58 = vmul.f32 0.1, %v276_v56  ;;  %747 = vmatprep.mubr.msk.f32.mxu1 %vm908_vm0, %v909_v1  ;;  %819 = vmatpush3.bf16.msra.mxu1 %v818_v8 }
 0x1f0   :  { %v280_v59 = vpop.f32.mrb[4].mxu1  ;;  %820 = vmatprep.subr.bf16.mxu1 %v907_v0 }
 0x1f1   :  { %v281_v60 = vadd.f32 %v636_v49, %v280_v59  ;;  %v735_v61 = vpop.f32.mrb[5].mxu1  ;;  %v291_v62 = vsel %vm285_vm7, %v276_v56, %v288_v58 }
 0x1f2   :  { %748 = vmatmul.mubr.msk.f32.gmra.mrb[8].mxu1 %vm194_vm3, %v291_v62 }
 0x1f3   :  { %vm286_vm8 = vcmp.gt.f32.partialorder %v281_v60, 0.0  ;;  %v289_v63 = vmul.f32 0.1, %v281_v60  ;;  %750 = vmatprep.mubr.msk.f32.mxu1 %vm908_vm0, %v909_v1  ;;  %822 = vmatpush3.bf16.msra.mxu1 %v821_v26 }
 0x1f5   :  { %v292_v2 = vsel %vm286_vm8, %v281_v60, %v289_v63 }
 0x1f6   :  { %751 = vmatmul.mubr.msk.f32.gmra.mrb[10].mxu1 %vm194_vm3, %v292_v2 }
 0x1f7   :  { %778 = vmatprep.mubr.msk.f32.mxu1 %vm908_vm0, %v909_v1 }
 0x2c1   :  { %v379_v10 = vpop.f32.mrb[6].mxu1 }
 0x2c2   :  { %v380_v11 = vadd.f32 %v640_v9, %v379_v10  ;;  %v746_v12 = vpop.f32.mrb[7].mxu1 }
 0x2c4   :  { %vm393_vm9 = vcmp.gt.f32.partialorder %v380_v11, 0.0  ;;  %v396_v13 = vmul.f32 0.1, %v380_v11 }
 0x2c5   :  { %v384_v14 = vpop.f32.mrb[8].mxu1 }
 0x2c6   :  { %v399_v15 = vsel %vm393_vm9, %v380_v11, %v396_v13  ;;  %v385_v16 = vadd.f32 %v640_v9, %v384_v14  ;;  %v749_v17 = vpop.f32.mrb[9].mxu1 }
 0x2c7   :  { %762 = vmatmul.mubr.msk.f32.vlgmr.msra.gmra.mrb[6].mxu0 %vm194_vm3, %v399_v15 }
 0x2c8   :  { %vm394_vm10 = vcmp.gt.f32.partialorder %v385_v16, 0.0  ;;  %v397_v18 = vmul.f32 0.1, %v385_v16  ;;  %764 = vmatprep.mubr.msk.f32.mxu0 %vm908_vm0, %v909_v1 }
 0x2c9   :  { %v389_v19 = vpop.f32.mrb[10].mxu1 }
 0x2ca   :  { %v390_v20 = vadd.f32 %v640_v9, %v389_v19  ;;  %v752_v0 = vpop.f32.mrb[11].mxu1  ;;  %v400_v21 = vsel %vm394_vm10, %v385_v16, %v397_v18 }
 0x2cb   :  { %765 = vmatmul.mubr.msk.f32.gmra.mrb[8].mxu0 %vm194_vm3, %v400_v21 }
 0x2cc   :  { %vm395_vm11 = vcmp.gt.f32.partialorder %v390_v20, 0.0  ;;  %v398_v22 = vmul.f32 0.1, %v390_v20  ;;  %767 = vmatprep.mubr.msk.f32.mxu0 %vm908_vm0, %v909_v1 }
 0x2ce   :  { %v401_v23 = vsel %vm395_vm11, %v390_v20, %v398_v22 }
 0x2cf   :  { %768 = vmatmul.mubr.msk.f32.gmra.mrb[10].mxu0 %vm194_vm3, %v401_v23 }
 0x39a   :  { %v488_v28 = vpop.f32.mrb[6].mxu0 }
 0x39b   :  { %v489_v29 = vadd.f32 %v644_v27, %v488_v28  ;;  %v763_v30 = vpop.f32.mrb[7].mxu0 }
 0x39d   :  { %vm502_vm12 = vcmp.gt.f32.partialorder %v489_v29, 0.0  ;;  %v505_v31 = vmul.f32 0.1, %v489_v29 }
 0x39e   :  { %v493_v32 = vpop.f32.mrb[8].mxu0 }
 0x39f   :  { %v508_v33 = vsel %vm502_vm12, %v489_v29, %v505_v31  ;;  %v494_v34 = vadd.f32 %v644_v27, %v493_v32  ;;  %v766_v35 = vpop.f32.mrb[9].mxu0 }
 0x3a0   :  { %779 = vmatmul.mubr.msk.f32.vlgmr.msra.gmra.mrb[12].mxu1 %vm194_vm3, %v508_v33 }
 0x3a1   :  { %vm503_vm13 = vcmp.gt.f32.partialorder %v494_v34, 0.0  ;;  %v506_v36 = vmul.f32 0.1, %v494_v34  ;;  %781 = vmatprep.mubr.msk.f32.mxu1 %vm908_vm0, %v909_v1 }
 0x3a2   :  { %v498_v37 = vpop.f32.mrb[10].mxu0 }
 0x3a3   :  { %v499_v38 = vadd.f32 %v644_v27, %v498_v37  ;;  %v769_v39 = vpop.f32.mrb[11].mxu0  ;;  %v509_v40 = vsel %vm503_vm13, %v494_v34, %v506_v36 }
 0x3a4   :  { %782 = vmatmul.mubr.msk.f32.gmra.mrb[14].mxu1 %vm194_vm3, %v509_v40 }
 0x3a5   :  { %vm504_vm14 = vcmp.gt.f32.partialorder %v499_v38, 0.0  ;;  %v507_v41 = vmul.f32 0.1, %v499_v38  ;;  %784 = vmatprep.mubr.msk.f32.mxu1 %vm908_vm0, %v909_v1 }
 0x3a7   :  { %v510_v42 = vsel %vm504_vm14, %v499_v38, %v507_v41 }
 0x3a8   :  { %785 = vmatmul.mubr.msk.f32.gmra.mrb[16].mxu1 %vm194_vm3, %v510_v42 }
 0x473   :  { %v597_v44 = vpop.f32.mrb[12].mxu1 }
 0x474   :  { %v598_v45 = vadd.f32 %v648_v43, %v597_v44  ;;  %v780_v46 = vpop.f32.mrb[13].mxu1 }
 0x476   :  { %611 = vst [vmem:[#allocation7] sm:$0xff] %v598_v45 }
 0x477   :  { %v602_v47 = vpop.f32.mrb[14].mxu1 }
 0x478   :  { %v603_v48 = vadd.f32 %v648_v43, %v602_v47  ;;  %v783_v49 = vpop.f32.mrb[15].mxu1 }
 0x47a   :  { %612 = vst [vmem:[#allocation7 + $0x8] sm:$0xff] %v603_v48 }
 0x47b   :  { %v607_v50 = vpop.f32.mrb[16].mxu1 }
 0x47c   :  { %v608_v51 = vadd.f32 %v648_v43, %v607_v50  ;;  %v786_v1 = vpop.f32.mrb[17].mxu1 }
 0x47e   :  { %613 = vst [vmem:[#allocation7 + $0x10] sm:$0xff] %v608_v51 }
 0x47f   :  { %886 = shalt.err (!%p883_p6)
}
 0x480   :  { %s887_s20 = scalar_lea.hbm %s1166_s11, 384 }
 0x481   :  { %p888_p7 = scmp.ne.s32.totalorder %s1166_s11, %s887_s20  ;;  %p891_p8 = scmp.lt.u32.totalorder %s887_s20, %s1166_s11 }
 0x483   :  { %p893_p9 = pnand %p891_p8, %p888_p7 }
 0x485   :  { %896 = shalt.err (!%p893_p9)
}
 0x486   :  { %625 = dma.vmem_to_hbm [thread:$0]  %s620_s2, 384, %s1166_s11, [#allocation4], %s904_s27, %s904_s27, %s905_s28  }
 0x487   :  { %901 = dma.done.wait [#allocation4], 384  }
 0x488   :  { %902 = vsyncadd [#allocation4], 4294966912 }
 0x489   :  { %629 = vsyncpa [#allocation3], 1 }
 0x48a   :  { %630 = vsyncpa [#allocation6], 1 }
 0x48b   :  { %631 = vsyncpa [#allocation4], 1 }

</bundles_post_ra>
